<compile_context>
chip_gen: v5e
topology: v5e:2x2
jax: 0.10.0
libtpu: 0.0.40
codegen_flags: <defaults>
</compile_context>

<pallas_src>
import jax
import jax.numpy as jnp
from jax.experimental import pallas as pl
from jax.experimental.pallas import tpu as pltpu


# ---------------------------------------------------------------------------
# helpers
# ---------------------------------------------------------------------------
def _round_up(x, m):
    return ((x + m - 1) // m) * m


def _pad_axis(a, axis, target):
    pad = target - a.shape[axis]
    if pad == 0:
        return a
    widths = [(0, 0)] * a.ndim
    widths[axis] = (0, pad)
    return jnp.pad(a, widths)


def _vmem_capacity_bytes():
    """Per-core VMEM capacity; conservative 64 MiB fallback (v7x per-TC)."""
    try:
        info = pltpu.get_tpu_info()
        for attr in ("vmem_capacity_bytes", "vmem_size_bytes", "vmem_bytes"):
            v = getattr(info, attr, None)
            if v:
                return int(v)
    except Exception:
        pass
    return 64 * 1024 * 1024


def _vmem_budget(capacity):
    # v7x: 64 MiB/TC -> ~44 MiB usable; v5e/v6e: 128 MiB -> ~100 MiB usable.
    return int(max(min(capacity - (20 << 20), 100 << 20), 16 << 20))


def _vmem_limit(need, capacity):
    # Computed need + headroom (compiler internal scratch, semaphores, ...).
    return int(min(capacity - (2 << 20),
                   max(int(need * 1.25) + (4 << 20), 32 << 20)))


def _row_tile_bounds(m, block_m):
    """Preferred / minimum row tile. Multiples of 256 for MXU fill when the
    problem has >= 256 rows (v6e/v7x MXU is 2x256x256); tiny inputs just use
    their own (8-aligned) row count."""
    m8 = _round_up(max(m, 1), 8)
    if m8 >= 256:
        return min(_round_up(block_m, 256), _round_up(m8, 256)), 256
    return m8, m8


def _plan_fused(m, d_pad, x_bytes, c_bytes, o_bytes, budget, block_m):
    """Pick (tm, tn) for the fused path.  Prefers a large row tile with the
    whole weight resident (single-buffered); tiles the output-feature axis
    (N) before shrinking tm below 256."""
    tm_max, tm_floor = _row_tile_bounds(m, block_m)

    def need(tm, tn, wbuf):
        return (2 * tm * d_pad * x_bytes                   # x tile (double-buffered)
                + wbuf * (d_pad * tn * c_bytes + 8 * tn * 4)  # Wc + bc blocks
                + 2 * tm * tn * o_bytes                    # out tile (double-buffered)
                + tm * tn * 4)                             # f32 matmul/epilogue scratch

    tn_cands = [d_pad]
    for t in (4096, 2048, 1024, 512, 256, 128):
        if t < d_pad and d_pad % t == 0:
            tn_cands.append(t)

    for tn in tn_cands:
        wbuf = 1 if tn == d_pad else 2   # single-buffer only grid-invariant weights
        tm = tm_max
        while True:
            n = need(tm, tn, wbuf)
            if n <= budget:
                return tm, tn, n
            if tm <= tm_floor:
                break
            tm = max(tm_floor, _round_up(tm // 2, 256 if tm // 2 >= 256 else 8))

    # TODO(synk): K-axis tiling with an f32 accumulator scratch for extreme
    # d_model where even a (d_pad, 128) weight block exceeds the budget.
    tn = tn_cands[-1]
    return tm_floor, tn, need(tm_floor, tn, 2)


def _plan_two_matmul(m, d_pad, h_pad, x_bytes, c_bytes, o_bytes, budget, block_m):
    tm_max, tm_floor = _row_tile_bounds(m, block_m)
    resident = 2 * d_pad * h_pad * c_bytes + 8 * (h_pad + d_pad) * 4

    def need(tm):
        return (resident
                + 2 * tm * d_pad * x_bytes     # x tile (double-buffered)
                + 2 * tm * d_pad * o_bytes     # out tile (double-buffered)
                + tm * h_pad * 4               # f32 hidden intermediate
                + tm * d_pad * 4)              # f32 output accumulator

    tm = tm_max
    while need(tm) > budget and tm > tm_floor:
        tm = max(tm_floor, _round_up(tm // 2, 256 if tm // 2 >= 256 else 8))
    # TODO(synk): chunk the hidden axis inside the kernel (fori_loop) when
    # W1 + W2 alone exceed the VMEM budget; this exact path is intended for
    # validation / per-step weights, not production sizes.
    return tm, need(tm)


# ---------------------------------------------------------------------------
# kernels
# ---------------------------------------------------------------------------
def _fused_kernel(x_ref, w_ref, b_ref, o_ref):
    # y = ReLU(x @ Wc + bc)   with Wc = W1 @ W2, bc = b1 @ W2 + b2
    x = x_ref[...].astype(w_ref.dtype)               # cast rides free in VPU slot
    y = jnp.dot(x, w_ref[...], preferred_element_type=jnp.float32)
    y = y + b_ref[...]
    o_ref[...] = jnp.maximum(y, 0.0).astype(o_ref.dtype)


def _two_matmul_kernel(x_ref, w1_ref, b1_ref, w2_ref, b2_ref, o_ref):
    # h = x @ W1 + b1 ; y = ReLU(h @ W2 + b2)   (f32 accumulation on the MXU)
    x = x_ref[...].astype(w1_ref.dtype)
    h = jnp.dot(x, w1_ref[...], preferred_element_type=jnp.float32)
    h = (h + b1_ref[...]).astype(w2_ref.dtype)
    y = jnp.dot(h, w2_ref[...], preferred_element_type=jnp.float32)
    y = y + b2_ref[...]
    o_ref[...] = jnp.maximum(y, 0.0).astype(o_ref.dtype)


# ---------------------------------------------------------------------------
# pallas_call builders (single_buffer toggles pl.Buffered(1) on weights)
# ---------------------------------------------------------------------------
def _call_fused(x_p, wc_p, bc_p, out_dtype, m_pad, d_pad, tm, tn,
                vmem_limit, cost, single_buffer):
    grid_m = m_pad // tm
    grid_n = d_pad // tn
    wkw = (dict(pipeline_mode=pl.Buffered(1))
           if (single_buffer and grid_n == 1) else {})

    if grid_n == 1:
        grid = (grid_m,)
        in_specs = [
            pl.BlockSpec((tm, d_pad), lambda i: (i, 0)),            # x tile
            pl.BlockSpec((d_pad, d_pad), lambda i: (0, 0), **wkw),  # Wc resident
            pl.BlockSpec((1, d_pad), lambda i: (0, 0), **wkw),      # bc resident
        ]
        out_specs = pl.BlockSpec((tm, d_pad), lambda i: (i, 0))
        dims = ("parallel",)
    else:
        # N outer (weight block changes rarely), M inner; both parallel so a
        # v7x megacore can split N and halve the per-core weight footprint.
        grid = (grid_n, grid_m)
        in_specs = [
            pl.BlockSpec((tm, d_pad), lambda j, i: (i, 0)),
            pl.BlockSpec((d_pad, tn), lambda j, i: (0, j)),
            pl.BlockSpec((1, tn), lambda j, i: (0, j)),
        ]
        out_specs = pl.BlockSpec((tm, tn), lambda j, i: (i, j))
        dims = ("parallel", "parallel")

    return pl.pallas_call(
        _fused_kernel,
        out_shape=jax.ShapeDtypeStruct((m_pad, d_pad), out_dtype),
        grid=grid,
        in_specs=in_specs,
        out_specs=out_specs,
        compiler_params=pltpu.CompilerParams(
            dimension_semantics=dims, vmem_limit_bytes=vmem_limit),
        cost_estimate=cost,
    )(x_p, wc_p, bc_p)


def _call_two_matmul(x_p, w1_p, b1_p, w2_p, b2_p, out_dtype, m_pad, d_pad,
                     h_pad, tm, vmem_limit, cost, single_buffer):
    grid = (m_pad // tm,)
    wkw = dict(pipeline_mode=pl.Buffered(1)) if single_buffer else {}
    return pl.pallas_call(
        _two_matmul_kernel,
        out_shape=jax.ShapeDtypeStruct((m_pad, d_pad), out_dtype),
        grid=grid,
        in_specs=[
            pl.BlockSpec((tm, d_pad), lambda i: (i, 0)),            # x tile
            pl.BlockSpec((d_pad, h_pad), lambda i: (0, 0), **wkw),  # W1 resident
            pl.BlockSpec((1, h_pad), lambda i: (0, 0), **wkw),      # b1 resident
            pl.BlockSpec((h_pad, d_pad), lambda i: (0, 0), **wkw),  # W2 resident
            pl.BlockSpec((1, d_pad), lambda i: (0, 0), **wkw),      # b2 resident
        ],
        out_specs=pl.BlockSpec((tm, d_pad), lambda i: (i, 0)),
        compiler_params=pltpu.CompilerParams(
            dimension_semantics=("parallel",), vmem_limit_bytes=vmem_limit),
        cost_estimate=cost,
    )(x_p, w1_p, b1_p, w2_p, b2_p)


# ---------------------------------------------------------------------------
# weight fusion (hoist out of the per-call hot path)
# ---------------------------------------------------------------------------
def make_fused_ffn_params(w1, b1, w2, b2, compute_dtype=jnp.bfloat16):
    """Collapse Linear∘Linear (no nonlinearity in between) once, offline:
        Wc = W1 @ W2,  bc = b1 @ W2 + b2.
    Call this once per weight update, not per forward call."""
    wc = jnp.dot(w1.astype(jnp.float32), w2.astype(jnp.float32))
    bc = jnp.dot(b1.astype(jnp.float32), w2.astype(jnp.float32)) \
        + b2.astype(jnp.float32)
    return wc.astype(compute_dtype), bc      # bc kept f32 for the epilogue


# ---------------------------------------------------------------------------
# forward wrapper
# ---------------------------------------------------------------------------
def ffn_forward(x, w1=None, b1=None, w2=None, b2=None, *,
                fused_params=None, fuse=True,
                compute_dtype=jnp.bfloat16, block_m=512):
    """x: (..., d_model); w1: (d_model, hidden); w2: (hidden, d_model).

    fuse=True  : single matmul with precollapsed Wc/bc (pass fused_params
                 from make_fused_ffn_params to keep the fusion off the hot
                 path).  Numerics differ slightly from the reference because
                 Wc is rounded to compute_dtype after the f32 product.
    fuse=False : exact two-matmul path (validation / per-step weights).
                 compute_dtype=float32 here is not a production config.
    """
    orig_shape = x.shape
    out_dtype = x.dtype
    d_model = orig_shape[-1]

    x2d = x.reshape(-1, d_model)
    m = x2d.shape[0]
    d_pad = _round_up(d_model, 128)

    x_bytes = jnp.dtype(x.dtype).itemsize
    c_bytes = jnp.dtype(compute_dtype).itemsize
    o_bytes = jnp.dtype(out_dtype).itemsize

    capacity = _vmem_capacity_bytes()
    budget = _vmem_budget(capacity)

    if fuse:
        if fused_params is None:
            # Prefer precomputing this outside the hot path.
            fused_params = make_fused_ffn_params(w1, b1, w2, b2, compute_dtype)
        wc, bc = fused_params
        wc_p = _pad_axis(_pad_axis(wc, 0, d_pad), 1, d_pad).astype(compute_dtype)
        bc_p = _pad_axis(bc.reshape(1, d_model).astype(jnp.float32), 1, d_pad)

        tm, tn, need = _plan_fused(m, d_pad, x_bytes, c_bytes, o_bytes,
                                   budget, block_m)
        vmem_limit = _vmem_limit(need, capacity)
        m_pad = pl.cdiv(m, tm) * tm
        x_p = _pad_axis(_pad_axis(x2d, 1, d_pad), 0, m_pad)   # native dtype

        cost = pl.CostEstimate(
            flops=int(2 * m_pad * d_pad * d_pad),
            transcendentals=0,
            bytes_accessed=int(m_pad * d_pad * x_bytes
                               + d_pad * d_pad * c_bytes + d_pad * 4
                               + m_pad * d_pad * o_bytes))

        args = (x_p, wc_p, bc_p, out_dtype, m_pad, d_pad, tm, tn,
                vmem_limit, cost)
        try:
            out = _call_fused(*args, single_buffer=True)
        except Exception:
            out = _call_fused(*args, single_buffer=False)
    else:
        hidden = w1.shape[1]
        h_pad = _round_up(hidden, 128)

        w1_p = _pad_axis(_pad_axis(w1, 0, d_pad), 1, h_pad).astype(compute_dtype)
        w2_p = _pad_axis(_pad_axis(w2, 0, h_pad), 1, d_pad).astype(compute_dtype)
        b1_p = _pad_axis(b1.reshape(1, hidden).astype(jnp.float32), 1, h_pad)
        b2_p = _pad_axis(b2.reshape(1, d_model).astype(jnp.float32), 1, d_pad)

        tm, need = _plan_two_matmul(m, d_pad, h_pad, x_bytes, c_bytes,
                                    o_bytes, budget, block_m)
        vmem_limit = _vmem_limit(need, capacity)
        m_pad = pl.cdiv(m, tm) * tm
        x_p = _pad_axis(_pad_axis(x2d, 1, d_pad), 0, m_pad)   # native dtype

        cost = pl.CostEstimate(
            flops=int(4 * m_pad * d_pad * h_pad),
            transcendentals=0,
            bytes_accessed=int(m_pad * d_pad * x_bytes
                               + 2 * d_pad * h_pad * c_bytes
                               + (h_pad + d_pad) * 4
                               + m_pad * d_pad * o_bytes))

        args = (x_p, w1_p, b1_p, w2_p, b2_p, out_dtype, m_pad, d_pad, h_pad,
                tm, vmem_limit, cost)
        try:
            out = _call_two_matmul(*args, single_buffer=True)
        except Exception:
            out = _call_two_matmul(*args, single_buffer=False)

    return out[:m, :d_model].reshape(orig_shape)


# ---------------------------------------------------------------------------
# deterministic init mimicking nn.Linear (uniform +-1/sqrt(fan_in))
# ---------------------------------------------------------------------------
def init_ffn_params(key, d_model, hidden_dim, dtype=jnp.float32):
    k1, k2, k3, k4 = jax.random.split(key, 4)
    bound1 = 1.0 / (d_model ** 0.5)
    bound2 = 1.0 / (hidden_dim ** 0.5)
    # stored (in, out) so kernels do x @ W (== PyTorch's x @ W.T with W (out, in))
    w1 = jax.random.uniform(k1, (d_model, hidden_dim), dtype, -bound1, bound1)
    b1 = jax.random.uniform(k2, (hidden_dim,), dtype, -bound1, bound1)
    w2 = jax.random.uniform(k3, (hidden_dim, d_model), dtype, -bound2, bound2)
    b2 = jax.random.uniform(k4, (d_model,), dtype, -bound2, bound2)
    return w1, b1, w2, b2


if __name__ == "__main__":
    key = jax.random.PRNGKey(0)
    batch, seq, d_model, hidden_dim = 2, 8, 32, 64

    kx, kp = jax.random.split(key)
    x = jax.random.normal(kx, (batch, seq, d_model), jnp.float32)
    w1, b1, w2, b2 = init_ffn_params(kp, d_model, hidden_dim)

    # Pure-JAX reference (same math as the PyTorch module).
    ref = jnp.maximum((x @ w1 + b1) @ w2 + b2, 0.0)

    # 1) Exact path: two-matmul kernel with f32 MXU inputs.
    out_exact = ffn_forward(x, w1, b1, w2, b2, fuse=False,
                            compute_dtype=jnp.float32)
    out_exact = jax.block_until_ready(out_exact)
    assert out_exact.shape == x.shape
    assert jnp.allclose(out_exact, ref, atol=1e-5, rtol=1e-5)

    # 2) Fast path: fused Wc = W1 @ W2 (precomputed once, off the hot path)
    #    with bf16 MXU inputs; relaxed tolerance since fusion + bf16 rounding
    #    slightly change numerics.
    fused = make_fused_ffn_params(w1, b1, w2, b2, compute_dtype=jnp.bfloat16)
    out_fast = ffn_forward(x, fused_params=fused, fuse=True,
                           compute_dtype=jnp.bfloat16)
    out_fast = jax.block_until_ready(out_fast)
    assert out_fast.shape == x.shape
    assert jnp.allclose(out_fast, ref, atol=3e-2, rtol=3e-2)

    print("KERNEL_OK")
</pallas_src>

<mosaic_0001>
module attributes {stable_mosaic.version = 11 : i64} {
  func.func @_two_matmul_kernel(%arg0: i32, %arg1: memref<16x128xf32, #tpu.memory_space<vmem>>, %arg2: memref<128x128xf32, #tpu.memory_space<vmem>>, %arg3: memref<1x128xf32, #tpu.memory_space<vmem>>, %arg4: memref<128x128xf32, #tpu.memory_space<vmem>>, %arg5: memref<1x128xf32, #tpu.memory_space<vmem>>, %arg6: memref<16x128xf32, #tpu.memory_space<vmem>>) attributes {dimension_semantics = [#tpu.dimension_semantics<parallel>], iteration_bounds = array<i64: 1>, scalar_prefetch = 0 : i64, scratch_operands = 0 : i64, tpu.core_type = #tpu.core_type<tc>, window_params = [{transform_indices = @transform_0, window_bounds = array<i64: 16, 128>}, {pipeline_mode = #tpu.pipeline_mode<synchronous>, transform_indices = @transform_1, window_bounds = array<i64: 128, 128>}, {pipeline_mode = #tpu.pipeline_mode<synchronous>, transform_indices = @transform_2, window_bounds = array<i64: 1, 128>}, {pipeline_mode = #tpu.pipeline_mode<synchronous>, transform_indices = @transform_3, window_bounds = array<i64: 128, 128>}, {pipeline_mode = #tpu.pipeline_mode<synchronous>, transform_indices = @transform_4, window_bounds = array<i64: 1, 128>}, {transform_indices = @transform_5, window_bounds = array<i64: 16, 128>}]} {
    %c0 = arith.constant 0 : index
    %c0_0 = arith.constant 0 : index
    %0 = vector.load %arg1[%c0, %c0_0] : memref<16x128xf32, #tpu.memory_space<vmem>>, vector<16x128xf32>
    %c0_1 = arith.constant 0 : index
    %c0_2 = arith.constant 0 : index
    %1 = vector.load %arg2[%c0_1, %c0_2] : memref<128x128xf32, #tpu.memory_space<vmem>>, vector<128x128xf32>
    %cst = arith.constant dense<0.000000e+00> : vector<16x128xf32>
    %2 = tpu.matmul %0, %1, %cst {dimension_numbers = #tpu.dot_dimension_numbers<[1], [0], [0], [1], [0, 0, 1, 1], [], []>} : vector<16x128xf32>, vector<128x128xf32>, vector<16x128xf32> -> vector<16x128xf32>
    %c0_3 = arith.constant 0 : index
    %c0_4 = arith.constant 0 : index
    %3 = vector.load %arg3[%c0_3, %c0_4] : memref<1x128xf32, #tpu.memory_space<vmem>>, vector<1x128xf32>
    %4 = vector.broadcast %3 : vector<1x128xf32> to vector<16x128xf32>
    %5 = arith.addf %2, %4 : vector<16x128xf32>
    %c0_5 = arith.constant 0 : index
    %c0_6 = arith.constant 0 : index
    %6 = vector.load %arg4[%c0_5, %c0_6] : memref<128x128xf32, #tpu.memory_space<vmem>>, vector<128x128xf32>
    %cst_7 = arith.constant dense<0.000000e+00> : vector<16x128xf32>
    %7 = tpu.matmul %5, %6, %cst_7 {dimension_numbers = #tpu.dot_dimension_numbers<[1], [0], [0], [1], [0, 0, 1, 1], [], []>} : vector<16x128xf32>, vector<128x128xf32>, vector<16x128xf32> -> vector<16x128xf32>
    %c0_8 = arith.constant 0 : index
    %c0_9 = arith.constant 0 : index
    %8 = vector.load %arg5[%c0_8, %c0_9] : memref<1x128xf32, #tpu.memory_space<vmem>>, vector<1x128xf32>
    %9 = vector.broadcast %8 : vector<1x128xf32> to vector<16x128xf32>
    %10 = arith.addf %7, %9 : vector<16x128xf32>
    %cst_10 = arith.constant 0.000000e+00 : f32
    %11 = vector.broadcast %cst_10 : f32 to vector<16x128xf32>
    %12 = arith.maximumf %10, %11 : vector<16x128xf32>
    %c0_11 = arith.constant 0 : index
    %c0_12 = arith.constant 0 : index
    %13 = vector.load %arg6[%c0_11, %c0_12] : memref<16x128xf32, #tpu.memory_space<vmem>>, vector<16x128xf32>
    tpu.vector_store %arg6[%c0_11, %c0_12], %12 {strides = array<i32>} : memref<16x128xf32, #tpu.memory_space<vmem>>, vector<16x128xf32>,
    return
  }
  func.func @transform_0(%arg0: i32) -> (i32, i32) {
    %c0_i32 = arith.constant 0 : i32
    %c0_i32_0 = arith.constant 0 : i32
    return %arg0, %c0_i32 : i32, i32
  }
  func.func @transform_1(%arg0: i32) -> (i32, i32) {
    %c0_i32 = arith.constant 0 : i32
    %c0_i32_0 = arith.constant 0 : i32
    %c0_i32_1 = arith.constant 0 : i32
    return %c0_i32, %c0_i32_0 : i32, i32
  }
  func.func @transform_2(%arg0: i32) -> (i32, i32) {
    %c0_i32 = arith.constant 0 : i32
    %c0_i32_0 = arith.constant 0 : i32
    %c0_i32_1 = arith.constant 0 : i32
    return %c0_i32, %c0_i32_0 : i32, i32
  }
  func.func @transform_3(%arg0: i32) -> (i32, i32) {
    %c0_i32 = arith.constant 0 : i32
    %c0_i32_0 = arith.constant 0 : i32
    %c0_i32_1 = arith.constant 0 : i32
    return %c0_i32, %c0_i32_0 : i32, i32
  }
  func.func @transform_4(%arg0: i32) -> (i32, i32) {
    %c0_i32 = arith.constant 0 : i32
    %c0_i32_0 = arith.constant 0 : i32
    %c0_i32_1 = arith.constant 0 : i32
    return %c0_i32, %c0_i32_0 : i32, i32
  }
  func.func @transform_5(%arg0: i32) -> (i32, i32) {
    %c0_i32 = arith.constant 0 : i32
    %c0_i32_0 = arith.constant 0 : i32
    return %arg0, %c0_i32 : i32, i32
  }
}

module attributes {stable_mosaic.version = 11 : i64} {
  func.func @_two_matmul_kernel(%arg0: i32, %arg1: memref<16x128xf32, #tpu.memory_space<vmem>>, %arg2: memref<128x128xf32, #tpu.memory_space<vmem>>, %arg3: memref<1x128xf32, #tpu.memory_space<vmem>>, %arg4: memref<128x128xf32, #tpu.memory_space<vmem>>, %arg5: memref<1x128xf32, #tpu.memory_space<vmem>>, %arg6: memref<16x128xf32, #tpu.memory_space<vmem>>) attributes {dimension_semantics = [#tpu.dimension_semantics<parallel>], iteration_bounds = array<i64: 1>, scalar_prefetch = 0 : i64, scratch_operands = 0 : i64, tpu.core_type = #tpu.core_type<tc>, window_params = [{transform_indices = @transform_0, window_bounds = array<i64: 16, 128>}, {pipeline_mode = #tpu.pipeline_mode<synchronous>, transform_indices = @transform_1, window_bounds = array<i64: 128, 128>}, {pipeline_mode = #tpu.pipeline_mode<synchronous>, transform_indices = @transform_2, window_bounds = array<i64: 1, 128>}, {pipeline_mode = #tpu.pipeline_mode<synchronous>, transform_indices = @transform_3, window_bounds = array<i64: 128, 128>}, {pipeline_mode = #tpu.pipeline_mode<synchronous>, transform_indices = @transform_4, window_bounds = array<i64: 1, 128>}, {transform_indices = @transform_5, window_bounds = array<i64: 16, 128>}]} {
    %c0 = arith.constant 0 : index
    %c0_0 = arith.constant 0 : index
    %0 = vector.load %arg1[%c0, %c0_0] : memref<16x128xf32, #tpu.memory_space<vmem>>, vector<16x128xf32>
    %c0_1 = arith.constant 0 : index
    %c0_2 = arith.constant 0 : index
    %1 = vector.load %arg2[%c0_1, %c0_2] : memref<128x128xf32, #tpu.memory_space<vmem>>, vector<128x128xf32>
    %cst = arith.constant dense<0.000000e+00> : vector<16x128xf32>
    %2 = tpu.matmul %0, %1, %cst {dimension_numbers = #tpu.dot_dimension_numbers<[1], [0], [0], [1], [0, 0, 1, 1], [], []>} : vector<16x128xf32>, vector<128x128xf32>, vector<16x128xf32> -> vector<16x128xf32>
    %c0_3 = arith.constant 0 : index
    %c0_4 = arith.constant 0 : index
    %3 = vector.load %arg3[%c0_3, %c0_4] : memref<1x128xf32, #tpu.memory_space<vmem>>, vector<1x128xf32>
    %4 = vector.broadcast %3 : vector<1x128xf32> to vector<16x128xf32>
    %5 = arith.addf %2, %4 : vector<16x128xf32>
    %c0_5 = arith.constant 0 : index
    %c0_6 = arith.constant 0 : index
    %6 = vector.load %arg4[%c0_5, %c0_6] : memref<128x128xf32, #tpu.memory_space<vmem>>, vector<128x128xf32>
    %cst_7 = arith.constant dense<0.000000e+00> : vector<16x128xf32>
    %7 = tpu.matmul %5, %6, %cst_7 {dimension_numbers = #tpu.dot_dimension_numbers<[1], [0], [0], [1], [0, 0, 1, 1], [], []>} : vector<16x128xf32>, vector<128x128xf32>, vector<16x128xf32> -> vector<16x128xf32>
    %c0_8 = arith.constant 0 : index
    %c0_9 = arith.constant 0 : index
    %8 = vector.load %arg5[%c0_8, %c0_9] : memref<1x128xf32, #tpu.memory_space<vmem>>, vector<1x128xf32>
    %9 = vector.broadcast %8 : vector<1x128xf32> to vector<16x128xf32>
    %10 = arith.addf %7, %9 : vector<16x128xf32>
    %cst_10 = arith.constant 0.000000e+00 : f32
    %11 = vector.broadcast %cst_10 : f32 to vector<16x128xf32>
    %12 = arith.maximumf %10, %11 : vector<16x128xf32>
    %c0_11 = arith.constant 0 : index
    %c0_12 = arith.constant 0 : index
    %13 = vector.load %arg6[%c0_11, %c0_12] : memref<16x128xf32, #tpu.memory_space<vmem>>, vector<16x128xf32>
    tpu.vector_store %arg6[%c0_11, %c0_12], %12 {strides = array<i32>} : memref<16x128xf32, #tpu.memory_space<vmem>>, vector<16x128xf32>,
    return
  }
  func.func @transform_0(%arg0: i32) -> (i32, i32) {
    %c0_i32 = arith.constant 0 : i32
    %c0_i32_0 = arith.constant 0 : i32
    return %arg0, %c0_i32 : i32, i32
  }
  func.func @transform_1(%arg0: i32) -> (i32, i32) {
    %c0_i32 = arith.constant 0 : i32
    %c0_i32_0 = arith.constant 0 : i32
    %c0_i32_1 = arith.constant 0 : i32
    return %c0_i32, %c0_i32_0 : i32, i32
  }
  func.func @transform_2(%arg0: i32) -> (i32, i32) {
    %c0_i32 = arith.constant 0 : i32
    %c0_i32_0 = arith.constant 0 : i32
    %c0_i32_1 = arith.constant 0 : i32
    return %c0_i32, %c0_i32_0 : i32, i32
  }
  func.func @transform_3(%arg0: i32) -> (i32, i32) {
    %c0_i32 = arith.constant 0 : i32
    %c0_i32_0 = arith.constant 0 : i32
    %c0_i32_1 = arith.constant 0 : i32
    return %c0_i32, %c0_i32_0 : i32, i32
  }
  func.func @transform_4(%arg0: i32) -> (i32, i32) {
    %c0_i32 = arith.constant 0 : i32
    %c0_i32_0 = arith.constant 0 : i32
    %c0_i32_1 = arith.constant 0 : i32
    return %c0_i32, %c0_i32_0 : i32, i32
  }
  func.func @transform_5(%arg0: i32) -> (i32, i32) {
    %c0_i32 = arith.constant 0 : i32
    %c0_i32_0 = arith.constant 0 : i32
    return %arg0, %c0_i32 : i32, i32
  }
}

</mosaic_0001>

<bundles_post_ra>
// kernel: tpu_custom_call.1
= control target key start
LH: loop header
LB: loop body
LE: loop exit
PB: predicated region body
PF: predicated region fallthrough
CT: control target
= control target key end

     0   :  { %10 = vsyncpa [#allocation3], 0  ;;  %s388_s0 = inlined_call_operand.hbm [shape: f32[16,128], index: 0, kind: input, shape index: {}]   ;;  %s389_s1 = inlined_call_operand.hbm [shape: f32[128,128], index: 1, kind: input, shape index: {}]   ;;  %s390_s2 = inlined_call_operand.vmem [shape: f32[1,128], index: 2, kind: input, shape index: {}]   ;;  %s391_s3 = inlined_call_operand.hbm [shape: f32[128,128], index: 3, kind: input, shape index: {}]   ;;  %s392_s4 = inlined_call_operand.vmem [shape: f32[1,128], index: 4, kind: input, shape index: {}]   ;;  %s393_s5 = inlined_call_operand.hbm [shape: f32[16,128], index: 5, kind: output, shape index: {}]  }
   0x1   :  { %11 = vsyncpa [#allocation6], 0 }
   0x2   :  { %12 = vsyncpa [#allocation4], 0  ;;  %s30_s20 = sshll.u32 %s389_s1, 4  ;;  %s322_s21 = smov [#allocation5]   ;;  %s31_s20 = int_to_ptr.hbm [resolvable:$true] %s30_s20 }
   0x3   :  { %s32_s22 = sshll.u32 %s322_s21, 4  ;;  %s17_s25 = sshll.u32 %s388_s0, 4  ;;  %s33_s22 = int_to_ptr.vmem [resolvable:$true] %s32_s22  ;;  %s18_s25 = int_to_ptr.hbm [resolvable:$true] %s17_s25 }
   0x4   :  { %s323_s26 = smov 128   ;;  %s324_s27 = smov 8  }
   0x5   :  { %38 = dma.hbm_to_vmem [thread:$0]  %s31_s20, 2048, %s33_s22, [#allocation6], %s323_s26, %s323_s26, %s324_s27  }
   0x6   :  { %s325_s28 = smov [#allocation2]   ;;  %s45_s1 = sshll.u32 %s391_s3, 4  ;;  %s46_s1 = int_to_ptr.hbm [resolvable:$true] %s45_s1 }
   0x7   :  { %s19_s29 = sshll.u32 %s325_s28, 4  ;;  %s326_s0 = smov [#allocation7]   ;;  %s20_s29 = int_to_ptr.vmem [resolvable:$true] %s19_s29 }
   0x8   :  { %25 = dma.hbm_to_vmem [thread:$0]  %s18_s25, 256, %s20_s29, [#allocation3], %s323_s26, %s323_s26, %s324_s27  }
   0x9   :  { %s47_s7 = sshll.u32 %s326_s0, 4  ;;  %s48_s7 = int_to_ptr.vmem [resolvable:$true] %s47_s7 }
   0xa   :  { %53 = dma.hbm_to_vmem [thread:$0]  %s46_s1, 2048, %s48_s7, [#allocation6], %s323_s26, %s323_s26, %s324_s27  }
   0xb   :  { %316 = dma.done.wait [#allocation3], 256  }
   0xc   :  { %317 = vsyncadd [#allocation3], 4294967040 }
   0xd   :  { %318 = dma.done.wait [#allocation6], 4096  }
   0xe   :  { %319 = vsyncadd [#allocation6], 4294963200  ;;  %v85_v0 = vld [vmem:[#allocation5 + $0x78] sm:$0xff]  ;;  %v84_v1 = vld [vmem:[#allocation5 + $0x70] sm:$0xff]  ;;  %s327_s11 = smov [#allocation8]  }
   0xf   :  { %180 = vmatpush.msra.mxu2 %v85_v0  ;;  %90 = vmatpush.msra.mxu0 %v85_v0  ;;  %v83_v2 = vld [vmem:[#allocation5 + $0x68] sm:$0xff]  ;;  %v82_v3 = vld [vmem:[#allocation5 + $0x60] sm:$0xff]  ;;  %v81_v4 = vld [vmem:[#allocation5 + $0x58] sm:$0xff]  ;;  %s164_s12 = sshll.u32 %s327_s11, 4  ;;  %s165_s12 = int_to_ptr.vmem [resolvable:$true] %s164_s12 }
  0x10   :  { %v128_v5 = vld [vmem:[#allocation7 + $0x78] sm:$0xff]  ;;  %v127_v6 = vld [vmem:[#allocation7 + $0x70] sm:$0xff]  ;;  %v126_v8 = vld [vmem:[#allocation7 + $0x68] sm:$0xff] }
  0x11   :  { %181 = vmatpush.msra.mxu2 %v84_v1  ;;  %91 = vmatpush.msra.mxu0 %v84_v1  ;;  %v80_v7 = vld [vmem:[#allocation5 + $0x50] sm:$0xff]  ;;  %v79_v9 = vld [vmem:[#allocation5 + $0x48] sm:$0xff]  ;;  %v125_v10 = vld [vmem:[#allocation7 + $0x60] sm:$0xff] }
  0x12   :  { %196 = vmatpush.msra.mxu3 %v128_v5  ;;  %133 = vmatpush.msra.mxu1 %v128_v5  ;;  %v78_v11 = vld [vmem:[#allocation5 + $0x40] sm:$0xff]  ;;  %v124_v12 = vld [vmem:[#allocation7 + $0x58] sm:$0xff]  ;;  %v123_v14 = vld [vmem:[#allocation7 + $0x50] sm:$0xff] }
  0x13   :  { %182 = vmatpush.msra.mxu2 %v83_v2  ;;  %92 = vmatpush.msra.mxu0 %v83_v2  ;;  %v77_v13 = vld [vmem:[#allocation5 + $0x38] sm:$0xff]  ;;  %v76_v15 = vld [vmem:[#allocation5 + $0x30] sm:$0xff]  ;;  %v122_v16 = vld [vmem:[#allocation7 + $0x48] sm:$0xff] }
  0x14   :  { %197 = vmatpush.msra.mxu3 %v127_v6  ;;  %134 = vmatpush.msra.mxu1 %v127_v6  ;;  %v75_v17 = vld [vmem:[#allocation5 + $0x28] sm:$0xff]  ;;  %v121_v18 = vld [vmem:[#allocation7 + $0x40] sm:$0xff]  ;;  %v120_v20 = vld [vmem:[#allocation7 + $0x38] sm:$0xff] }
  0x15   :  { %183 = vmatpush.msra.mxu2 %v82_v3  ;;  %93 = vmatpush.msra.mxu0 %v82_v3  ;;  %v74_v19 = vld [vmem:[#allocation5 + $0x20] sm:$0xff]  ;;  %v73_v21 = vld [vmem:[#allocation5 + $0x18] sm:$0xff]  ;;  %v119_v22 = vld [vmem:[#allocation7 + $0x30] sm:$0xff] }
  0x16   :  { %198 = vmatpush.msra.mxu3 %v126_v8  ;;  %135 = vmatpush.msra.mxu1 %v126_v8  ;;  %v72_v23 = vld [vmem:[#allocation5 + $0x10] sm:$0xff]  ;;  %v118_v24 = vld [vmem:[#allocation7 + $0x28] sm:$0xff]  ;;  %v117_v26 = vld [vmem:[#allocation7 + $0x20] sm:$0xff] }
  0x17   :  { %184 = vmatpush.msra.mxu2 %v81_v4  ;;  %94 = vmatpush.msra.mxu0 %v81_v4  ;;  %v71_v25 = vld [vmem:[#allocation5 + $0x8] sm:$0xff]  ;;  %v70_v27 = vld [vmem:[#allocation5] sm:$0xff]  ;;  %v69_v28 = vld [vmem:[#allocation2 + $0x8] sm:$0xff] }
  0x18   :  { %199 = vmatpush.msra.mxu3 %v125_v10  ;;  %136 = vmatpush.msra.mxu1 %v125_v10  ;;  %v68_v29 = vld [vmem:[#allocation2] sm:$0xff]  ;;  %v116_v30 = vld [vmem:[#allocation7 + $0x18] sm:$0xff]  ;;  %v114_v32 = vld [vmem:[#allocation7 + $0x8] sm:$0xff] }
  0x19   :  { %185 = vmatpush.msra.mxu2 %v80_v7  ;;  %95 = vmatpush.msra.mxu0 %v80_v7  ;;  %v115_v31 = vld [vmem:[#allocation7 + $0x10] sm:$0xff]  ;;  %v113_v33 = vld [vmem:[#allocation7] sm:$0xff] }
  0x1a   :  { %200 = vmatpush.msra.mxu3 %v124_v12  ;;  %137 = vmatpush.msra.mxu1 %v124_v12  ;;  %v218_v34 = vld [vmem:[%s390_s2] ss:$0 sm:$0xff]  ;;  %s166_s2 = sshll.u32 %s393_s5, 4  ;;  %s167_s2 = int_to_ptr.hbm [resolvable:$true] %s166_s2 }
  0x1b   :  { %186 = vmatpush.msra.mxu2 %v79_v9  ;;  %96 = vmatpush.msra.mxu0 %v79_v9  ;;  %v219_v39 = vld [vmem:[%s392_s4] ss:$0 sm:$0xff] }
  0x1c   :  { %201 = vmatpush.msra.mxu3 %v123_v14  ;;  %138 = vmatpush.msra.mxu1 %v123_v14 }
  0x1d   :  { %187 = vmatpush.msra.mxu2 %v78_v11  ;;  %97 = vmatpush.msra.mxu0 %v78_v11 }
  0x1e   :  { %202 = vmatpush.msra.mxu3 %v122_v16  ;;  %139 = vmatpush.msra.mxu1 %v122_v16 }
  0x1f   :  { %188 = vmatpush.msra.mxu2 %v77_v13  ;;  %98 = vmatpush.msra.mxu0 %v77_v13 }
  0x20   :  { %203 = vmatpush.msra.mxu3 %v121_v18  ;;  %140 = vmatpush.msra.mxu1 %v121_v18 }
  0x21   :  { %189 = vmatpush.msra.mxu2 %v76_v15  ;;  %99 = vmatpush.msra.mxu0 %v76_v15 }
  0x22   :  { %204 = vmatpush.msra.mxu3 %v120_v20  ;;  %141 = vmatpush.msra.mxu1 %v120_v20 }
  0x23   :  { %190 = vmatpush.msra.mxu2 %v75_v17  ;;  %100 = vmatpush.msra.mxu0 %v75_v17 }
  0x24   :  { %205 = vmatpush.msra.mxu3 %v119_v22  ;;  %142 = vmatpush.msra.mxu1 %v119_v22 }
  0x25   :  { %191 = vmatpush.msra.mxu2 %v74_v19  ;;  %101 = vmatpush.msra.mxu0 %v74_v19 }
  0x26   :  { %206 = vmatpush.msra.mxu3 %v118_v24  ;;  %143 = vmatpush.msra.mxu1 %v118_v24 }
  0x27   :  { %192 = vmatpush.msra.mxu2 %v73_v21  ;;  %102 = vmatpush.msra.mxu0 %v73_v21 }
  0x28   :  { %207 = vmatpush.msra.mxu3 %v117_v26  ;;  %144 = vmatpush.msra.mxu1 %v117_v26 }
  0x29   :  { %193 = vmatpush.msra.mxu2 %v72_v23  ;;  %103 = vmatpush.msra.mxu0 %v72_v23 }
  0x2a   :  { %208 = vmatpush.msra.mxu3 %v116_v30  ;;  %145 = vmatpush.msra.mxu1 %v116_v30 }
  0x2b   :  { %194 = vmatpush.msra.mxu2 %v71_v25  ;;  %104 = vmatpush.msra.mxu0 %v71_v25 }
  0x2c   :  { %209 = vmatpush.msra.mxu3 %v115_v31  ;;  %146 = vmatpush.msra.mxu1 %v115_v31 }
  0x2d   :  { %195 = vmatpush.msra.mxu2 %v70_v27  ;;  %105 = vmatpush.msra.mxu0 %v70_v27 }
  0x2e   :  { %109 = vmatmul.f32.vlgmr.msra.gmra.mxu2 %v69_v28  ;;  %106 = vmatmul.f32.vlgmr.msra.gmra.mxu0 %v68_v29 }
  0x2f   :  { %210 = vmatpush.msra.mxu3 %v114_v32  ;;  %147 = vmatpush.msra.mxu1 %v114_v32 }
  0x31   :  { %211 = vmatpush.msra.mxu3 %v113_v33  ;;  %148 = vmatpush.msra.mxu1 %v113_v33 }
  0xab   :  { %v107_v35 = vpop.f32.mrf.mxu0 }
  0xac   :  { %v108_v36 = vadd.f32 %v218_v34, %v107_v35 }
  0xae   :  { %149 = vmatmul.f32.vlgmr.msra.gmra.mxu1 %v108_v36 }
  0xb1   :  { %v110_v37 = vpop.f32.mrf.mxu2 }
  0xb2   :  { %v111_v38 = vadd.f32 %v218_v34, %v110_v37 }
  0xb4   :  { %152 = vmatmul.f32.vlgmr.msra.gmra.mxu3 %v111_v38 }
 0x12b   :  { %v150_v40 = vpop.f32.mrf.mxu1 }
 0x12c   :  { %v151_v41 = vadd.f32 %v219_v39, %v150_v40 }
 0x12e   :  { %v156_v42 = vmax.f32 %v151_v41, 0.0 }
 0x130   :  { %158 = vst [vmem:[#allocation8] sm:$0xff] %v156_v42 }
 0x137   :  { %v153_v43 = vpop.f32.mrf.mxu3 }
 0x138   :  { %v154_v44 = vadd.f32 %v219_v39, %v153_v43 }
 0x13a   :  { %v157_v45 = vmax.f32 %v154_v44, 0.0 }
 0x13c   :  { %159 = vst [vmem:[#allocation8 + $0x8] sm:$0xff] %v157_v45 }
 0x13d   :  { %172 = dma.vmem_to_hbm [thread:$0]  %s165_s12, 256, %s167_s2, [#allocation4], %s323_s26, %s323_s26, %s324_s27  }
 0x13e   :  { %320 = dma.done.wait [#allocation4], 256  }
 0x13f   :  { %321 = vsyncadd [#allocation4], 4294967040 }
 0x140   :  { %177 = vsyncpa [#allocation3], 1 }
 0x141   :  { %178 = vsyncpa [#allocation6], 1 }
 0x142   :  { %179 = vsyncpa [#allocation4], 1 }

// kernel: tpu_custom_call.1
= control target key start
LH: loop header
LB: loop body
LE: loop exit
PB: predicated region body
PF: predicated region fallthrough
CT: control target
= control target key end

     0   :  { %10 = vsyncpa [#allocation3], 0  ;;  %s388_s0 = inlined_call_operand.hbm [shape: f32[16,128], index: 0, kind: input, shape index: {}]   ;;  %s389_s1 = inlined_call_operand.hbm [shape: f32[128,128], index: 1, kind: input, shape index: {}]   ;;  %s390_s2 = inlined_call_operand.vmem [shape: f32[1,128], index: 2, kind: input, shape index: {}]   ;;  %s391_s3 = inlined_call_operand.hbm [shape: f32[128,128], index: 3, kind: input, shape index: {}]   ;;  %s392_s4 = inlined_call_operand.vmem [shape: f32[1,128], index: 4, kind: input, shape index: {}]   ;;  %s393_s5 = inlined_call_operand.hbm [shape: f32[16,128], index: 5, kind: output, shape index: {}]  }
   0x1   :  { %11 = vsyncpa [#allocation6], 0 }
   0x2   :  { %12 = vsyncpa [#allocation4], 0  ;;  %s30_s20 = sshll.u32 %s389_s1, 4  ;;  %s322_s21 = smov [#allocation5]   ;;  %s31_s20 = int_to_ptr.hbm [resolvable:$true] %s30_s20 }
   0x3   :  { %s32_s22 = sshll.u32 %s322_s21, 4  ;;  %s17_s25 = sshll.u32 %s388_s0, 4  ;;  %s33_s22 = int_to_ptr.vmem [resolvable:$true] %s32_s22  ;;  %s18_s25 = int_to_ptr.hbm [resolvable:$true] %s17_s25 }
   0x4   :  { %s323_s26 = smov 128   ;;  %s324_s27 = smov 8  }
   0x5   :  { %38 = dma.hbm_to_vmem [thread:$0]  %s31_s20, 2048, %s33_s22, [#allocation6], %s323_s26, %s323_s26, %s324_s27  }
   0x6   :  { %s325_s28 = smov [#allocation2]   ;;  %s45_s1 = sshll.u32 %s391_s3, 4  ;;  %s46_s1 = int_to_ptr.hbm [resolvable:$true] %s45_s1 }
   0x7   :  { %s19_s29 = sshll.u32 %s325_s28, 4  ;;  %s326_s0 = smov [#allocation7]   ;;  %s20_s29 = int_to_ptr.vmem [resolvable:$true] %s19_s29 }
   0x8   :  { %25 = dma.hbm_to_vmem [thread:$0]  %s18_s25, 256, %s20_s29, [#allocation3], %s323_s26, %s323_s26, %s324_s27  }
   0x9   :  { %s47_s7 = sshll.u32 %s326_s0, 4  ;;  %s48_s7 = int_to_ptr.vmem [resolvable:$true] %s47_s7 }
   0xa   :  { %53 = dma.hbm_to_vmem [thread:$0]  %s46_s1, 2048, %s48_s7, [#allocation6], %s323_s26, %s323_s26, %s324_s27  }
   0xb   :  { %316 = dma.done.wait [#allocation3], 256  }
   0xc   :  { %317 = vsyncadd [#allocation3], 4294967040 }
   0xd   :  { %318 = dma.done.wait [#allocation6], 4096  }
   0xe   :  { %319 = vsyncadd [#allocation6], 4294963200  ;;  %v85_v0 = vld [vmem:[#allocation5 + $0x78] sm:$0xff]  ;;  %v84_v1 = vld [vmem:[#allocation5 + $0x70] sm:$0xff]  ;;  %s327_s11 = smov [#allocation8]  }
   0xf   :  { %180 = vmatpush.msra.mxu2 %v85_v0  ;;  %90 = vmatpush.msra.mxu0 %v85_v0  ;;  %v83_v2 = vld [vmem:[#allocation5 + $0x68] sm:$0xff]  ;;  %v82_v3 = vld [vmem:[#allocation5 + $0x60] sm:$0xff]  ;;  %v81_v4 = vld [vmem:[#allocation5 + $0x58] sm:$0xff]  ;;  %s164_s12 = sshll.u32 %s327_s11, 4  ;;  %s165_s12 = int_to_ptr.vmem [resolvable:$true] %s164_s12 }
  0x10   :  { %v128_v5 = vld [vmem:[#allocation7 + $0x78] sm:$0xff]  ;;  %v127_v6 = vld [vmem:[#allocation7 + $0x70] sm:$0xff]  ;;  %v126_v8 = vld [vmem:[#allocation7 + $0x68] sm:$0xff] }
  0x11   :  { %181 = vmatpush.msra.mxu2 %v84_v1  ;;  %91 = vmatpush.msra.mxu0 %v84_v1  ;;  %v80_v7 = vld [vmem:[#allocation5 + $0x50] sm:$0xff]  ;;  %v79_v9 = vld [vmem:[#allocation5 + $0x48] sm:$0xff]  ;;  %v125_v10 = vld [vmem:[#allocation7 + $0x60] sm:$0xff] }
  0x12   :  { %196 = vmatpush.msra.mxu3 %v128_v5  ;;  %133 = vmatpush.msra.mxu1 %v128_v5  ;;  %v78_v11 = vld [vmem:[#allocation5 + $0x40] sm:$0xff]  ;;  %v124_v12 = vld [vmem:[#allocation7 + $0x58] sm:$0xff]  ;;  %v123_v14 = vld [vmem:[#allocation7 + $0x50] sm:$0xff] }
  0x13   :  { %182 = vmatpush.msra.mxu2 %v83_v2  ;;  %92 = vmatpush.msra.mxu0 %v83_v2  ;;  %v77_v13 = vld [vmem:[#allocation5 + $0x38] sm:$0xff]  ;;  %v76_v15 = vld [vmem:[#allocation5 + $0x30] sm:$0xff]  ;;  %v122_v16 = vld [vmem:[#allocation7 + $0x48] sm:$0xff] }
  0x14   :  { %197 = vmatpush.msra.mxu3 %v127_v6  ;;  %134 = vmatpush.msra.mxu1 %v127_v6  ;;  %v75_v17 = vld [vmem:[#allocation5 + $0x28] sm:$0xff]  ;;  %v121_v18 = vld [vmem:[#allocation7 + $0x40] sm:$0xff]  ;;  %v120_v20 = vld [vmem:[#allocation7 + $0x38] sm:$0xff] }
  0x15   :  { %183 = vmatpush.msra.mxu2 %v82_v3  ;;  %93 = vmatpush.msra.mxu0 %v82_v3  ;;  %v74_v19 = vld [vmem:[#allocation5 + $0x20] sm:$0xff]  ;;  %v73_v21 = vld [vmem:[#allocation5 + $0x18] sm:$0xff]  ;;  %v119_v22 = vld [vmem:[#allocation7 + $0x30] sm:$0xff] }
  0x16   :  { %198 = vmatpush.msra.mxu3 %v126_v8  ;;  %135 = vmatpush.msra.mxu1 %v126_v8  ;;  %v72_v23 = vld [vmem:[#allocation5 + $0x10] sm:$0xff]  ;;  %v118_v24 = vld [vmem:[#allocation7 + $0x28] sm:$0xff]  ;;  %v117_v26 = vld [vmem:[#allocation7 + $0x20] sm:$0xff] }
  0x17   :  { %184 = vmatpush.msra.mxu2 %v81_v4  ;;  %94 = vmatpush.msra.mxu0 %v81_v4  ;;  %v71_v25 = vld [vmem:[#allocation5 + $0x8] sm:$0xff]  ;;  %v70_v27 = vld [vmem:[#allocation5] sm:$0xff]  ;;  %v69_v28 = vld [vmem:[#allocation2 + $0x8] sm:$0xff] }
  0x18   :  { %199 = vmatpush.msra.mxu3 %v125_v10  ;;  %136 = vmatpush.msra.mxu1 %v125_v10  ;;  %v68_v29 = vld [vmem:[#allocation2] sm:$0xff]  ;;  %v116_v30 = vld [vmem:[#allocation7 + $0x18] sm:$0xff]  ;;  %v114_v32 = vld [vmem:[#allocation7 + $0x8] sm:$0xff] }
  0x19   :  { %185 = vmatpush.msra.mxu2 %v80_v7  ;;  %95 = vmatpush.msra.mxu0 %v80_v7  ;;  %v115_v31 = vld [vmem:[#allocation7 + $0x10] sm:$0xff]  ;;  %v113_v33 = vld [vmem:[#allocation7] sm:$0xff] }
  0x1a   :  { %200 = vmatpush.msra.mxu3 %v124_v12  ;;  %137 = vmatpush.msra.mxu1 %v124_v12  ;;  %v218_v34 = vld [vmem:[%s390_s2] ss:$0 sm:$0xff]  ;;  %s166_s2 = sshll.u32 %s393_s5, 4  ;;  %s167_s2 = int_to_ptr.hbm [resolvable:$true] %s166_s2 }
  0x1b   :  { %186 = vmatpush.msra.mxu2 %v79_v9  ;;  %96 = vmatpush.msra.mxu0 %v79_v9  ;;  %v219_v39 = vld [vmem:[%s392_s4] ss:$0 sm:$0xff] }
  0x1c   :  { %201 = vmatpush.msra.mxu3 %v123_v14  ;;  %138 = vmatpush.msra.mxu1 %v123_v14 }
  0x1d   :  { %187 = vmatpush.msra.mxu2 %v78_v11  ;;  %97 = vmatpush.msra.mxu0 %v78_v11 }
  0x1e   :  { %202 = vmatpush.msra.mxu3 %v122_v16  ;;  %139 = vmatpush.msra.mxu1 %v122_v16 }
  0x1f   :  { %188 = vmatpush.msra.mxu2 %v77_v13  ;;  %98 = vmatpush.msra.mxu0 %v77_v13 }
  0x20   :  { %203 = vmatpush.msra.mxu3 %v121_v18  ;;  %140 = vmatpush.msra.mxu1 %v121_v18 }
  0x21   :  { %189 = vmatpush.msra.mxu2 %v76_v15  ;;  %99 = vmatpush.msra.mxu0 %v76_v15 }
  0x22   :  { %204 = vmatpush.msra.mxu3 %v120_v20  ;;  %141 = vmatpush.msra.mxu1 %v120_v20 }
  0x23   :  { %190 = vmatpush.msra.mxu2 %v75_v17  ;;  %100 = vmatpush.msra.mxu0 %v75_v17 }
  0x24   :  { %205 = vmatpush.msra.mxu3 %v119_v22  ;;  %142 = vmatpush.msra.mxu1 %v119_v22 }
  0x25   :  { %191 = vmatpush.msra.mxu2 %v74_v19  ;;  %101 = vmatpush.msra.mxu0 %v74_v19 }
  0x26   :  { %206 = vmatpush.msra.mxu3 %v118_v24  ;;  %143 = vmatpush.msra.mxu1 %v118_v24 }
  0x27   :  { %192 = vmatpush.msra.mxu2 %v73_v21  ;;  %102 = vmatpush.msra.mxu0 %v73_v21 }
  0x28   :  { %207 = vmatpush.msra.mxu3 %v117_v26  ;;  %144 = vmatpush.msra.mxu1 %v117_v26 }
  0x29   :  { %193 = vmatpush.msra.mxu2 %v72_v23  ;;  %103 = vmatpush.msra.mxu0 %v72_v23 }
  0x2a   :  { %208 = vmatpush.msra.mxu3 %v116_v30  ;;  %145 = vmatpush.msra.mxu1 %v116_v30 }
  0x2b   :  { %194 = vmatpush.msra.mxu2 %v71_v25  ;;  %104 = vmatpush.msra.mxu0 %v71_v25 }
  0x2c   :  { %209 = vmatpush.msra.mxu3 %v115_v31  ;;  %146 = vmatpush.msra.mxu1 %v115_v31 }
  0x2d   :  { %195 = vmatpush.msra.mxu2 %v70_v27  ;;  %105 = vmatpush.msra.mxu0 %v70_v27 }
  0x2e   :  { %109 = vmatmul.f32.vlgmr.msra.gmra.mxu2 %v69_v28  ;;  %106 = vmatmul.f32.vlgmr.msra.gmra.mxu0 %v68_v29 }
  0x2f   :  { %210 = vmatpush.msra.mxu3 %v114_v32  ;;  %147 = vmatpush.msra.mxu1 %v114_v32 }
  0x31   :  { %211 = vmatpush.msra.mxu3 %v113_v33  ;;  %148 = vmatpush.msra.mxu1 %v113_v33 }
  0xab   :  { %v107_v35 = vpop.f32.mrf.mxu0 }
  0xac   :  { %v108_v36 = vadd.f32 %v218_v34, %v107_v35 }
  0xae   :  { %149 = vmatmul.f32.vlgmr.msra.gmra.mxu1 %v108_v36 }
  0xb1   :  { %v110_v37 = vpop.f32.mrf.mxu2 }
  0xb2   :  { %v111_v38 = vadd.f32 %v218_v34, %v110_v37 }
  0xb4   :  { %152 = vmatmul.f32.vlgmr.msra.gmra.mxu3 %v111_v38 }
 0x12b   :  { %v150_v40 = vpop.f32.mrf.mxu1 }
 0x12c   :  { %v151_v41 = vadd.f32 %v219_v39, %v150_v40 }
 0x12e   :  { %v156_v42 = vmax.f32 %v151_v41, 0.0 }
 0x130   :  { %158 = vst [vmem:[#allocation8] sm:$0xff] %v156_v42 }
 0x137   :  { %v153_v43 = vpop.f32.mrf.mxu3 }
 0x138   :  { %v154_v44 = vadd.f32 %v219_v39, %v153_v43 }
 0x13a   :  { %v157_v45 = vmax.f32 %v154_v44, 0.0 }
 0x13c   :  { %159 = vst [vmem:[#allocation8 + $0x8] sm:$0xff] %v157_v45 }
 0x13d   :  { %172 = dma.vmem_to_hbm [thread:$0]  %s165_s12, 256, %s167_s2, [#allocation4], %s323_s26, %s323_s26, %s324_s27  }
 0x13e   :  { %320 = dma.done.wait [#allocation4], 256  }
 0x13f   :  { %321 = vsyncadd [#allocation4], 4294967040 }
 0x140   :  { %177 = vsyncpa [#allocation3], 1 }
 0x141   :  { %178 = vsyncpa [#allocation6], 1 }
 0x142   :  { %179 = vsyncpa [#allocation4], 1 }

</bundles_post_ra>
